<compile_context>
chip_gen: v7x
topology: tpu7x:2x2x1
jax: 0.10.0
libtpu: 0.0.40
codegen_flags: <defaults>
</compile_context>

<pallas_src>
import math
import functools

import jax
import jax.numpy as jnp
from jax.experimental import pallas as pl
from jax.experimental.pallas import tpu as pltpu

_LANE = 128
_SUBLANE = 8


# ---------------------------------------------------------------------------
# Buffer setup (deterministic, mirrors the PyTorch __init__)
# ---------------------------------------------------------------------------
def make_positional_encoding(d_model, max_len=5000, dtype=jnp.float32):
    # Same restriction as the PyTorch original (it also breaks for odd d_model).
    assert d_model % 2 == 0, "PositionalEncoding requires an even d_model"
    position = jnp.arange(max_len, dtype=jnp.float32)[:, None]              # (max_len, 1)
    div_term = jnp.exp(
        jnp.arange(0, d_model, 2, dtype=jnp.float32) * (-math.log(10000.0) / d_model)
    )                                                                        # (d_model//2,)
    pe = jnp.zeros((max_len, d_model), dtype=jnp.float32)
    pe = pe.at[:, 0::2].set(jnp.sin(position * div_term))
    pe = pe.at[:, 1::2].set(jnp.cos(position * div_term))
    # pe.unsqueeze(0).transpose(0, 1) -> (max_len, 1, d_model)
    return pe[:, None, :].astype(dtype)


# ---------------------------------------------------------------------------
# In-kernel dropout mask: counter-based hash, int32 ops only (portable to
# Mosaic and the CPU interpreter -- replaces pltpu.prng_* from the old version)
# ---------------------------------------------------------------------------
def _as_i32_const(x):
    x &= 0xFFFFFFFF
    return x - (1 << 32) if x >= (1 << 31) else x


_MIX1 = _as_i32_const(0x9E3779B9)
_MIX2 = _as_i32_const(0x7FEB352D)
_MIX3 = _as_i32_const(0x846CA68B)


def _srl(x, k):
    # Logical right shift for int32: arithmetic shift + mask (no unsigned ops needed).
    return (x >> k) & jnp.int32((1 << (32 - k)) - 1)


def _keep_mask(ids_i32, seed_i32, p):
    """Per-element uniform in [0,1) from a hash of (element id, seed); keep iff u >= p."""
    h = ids_i32 ^ (seed_i32 * jnp.int32(_MIX1))
    h = h ^ _srl(h, 16)
    h = h * jnp.int32(_MIX2)
    h = h ^ _srl(h, 15)
    h = h * jnp.int32(_MIX3)
    h = h ^ _srl(h, 16)
    u = _srl(h, 9).astype(jnp.float32) * jnp.float32(1.0 / (1 << 23))
    return u >= jnp.float32(p)


# ---------------------------------------------------------------------------
# Kernels: flattened (S, B*D) path (lane-dense; used when D % 128 == 0 or B == 1)
# ---------------------------------------------------------------------------
def _pe_add_flat_kernel(x_ref, pe_ref, o_ref, *, batch):
    pe_t = pe_ref[...]                                    # (ts, D)
    if batch > 1:
        pe_t = jnp.concatenate([pe_t] * batch, axis=-1)   # (ts, B*D), lane-aligned copies
    o_ref[...] = (x_ref[...] + pe_t).astype(o_ref.dtype)


def _pe_add_dropout_flat_kernel(seed_ref, x_ref, pe_ref, o_ref, *,
                                batch, p, block_rows, n_cols):
    pe_t = pe_ref[...]
    if batch > 1:
        pe_t = jnp.concatenate([pe_t] * batch, axis=-1)
    y = x_ref[...] + pe_t                                  # (ts, B*D), dense vregs

    rows = jax.lax.broadcasted_iota(jnp.int32, y.shape, 0) + pl.program_id(0) * block_rows
    cols = jax.lax.broadcasted_iota(jnp.int32, y.shape, 1)
    ids = rows * jnp.int32(n_cols) + cols
    keep = _keep_mask(ids, seed_ref[0], p)
    scale = jnp.asarray(1.0 / (1.0 - p), dtype=y.dtype)
    o_ref[...] = jnp.where(keep, y * scale, jnp.zeros_like(y)).astype(o_ref.dtype)


# ---------------------------------------------------------------------------
# Kernels: (ts, B, D) fallback path (arbitrary d_model / batch)
# ---------------------------------------------------------------------------
def _pe_add_3d_kernel(x_ref, pe_ref, o_ref):
    # (ts, B, D) + (ts, 1, D) broadcast over batch
    o_ref[...] = (x_ref[...] + pe_ref[...]).astype(o_ref.dtype)


def _pe_add_dropout_3d_kernel(seed_ref, x_ref, pe_ref, o_ref, *,
                              p, block_rows, batch, d_model):
    y = x_ref[...] + pe_ref[...]                           # (ts, B, D)
    s_idx = jax.lax.broadcasted_iota(jnp.int32, y.shape, 0) + pl.program_id(0) * block_rows
    b_idx = jax.lax.broadcasted_iota(jnp.int32, y.shape, 1)
    d_idx = jax.lax.broadcasted_iota(jnp.int32, y.shape, 2)
    ids = (s_idx * jnp.int32(batch) + b_idx) * jnp.int32(d_model) + d_idx
    keep = _keep_mask(ids, seed_ref[0], p)
    scale = jnp.asarray(1.0 / (1.0 - p), dtype=y.dtype)
    o_ref[...] = jnp.where(keep, y * scale, jnp.zeros_like(y)).astype(o_ref.dtype)


# ---------------------------------------------------------------------------
# Tile-size selection (VMEM-budget driven)
# ---------------------------------------------------------------------------
def _round_up(v, m):
    return (v + m - 1) // m * m


def _choose_block_rows(n_rows, padded_row_bytes, target_bytes=1 << 20):
    """Rows per tile: a multiple of 8 (or the full extent), ~target_bytes per x tile."""
    if n_rows <= _SUBLANE:
        return n_rows
    rows = max(1, target_bytes // max(padded_row_bytes, 1))
    rows = max(_SUBLANE, min(rows, 2048))
    rows = (rows // _SUBLANE) * _SUBLANE
    return n_rows if rows >= n_rows else rows


def _legalize_block_rows(requested, n_rows):
    if requested >= n_rows:
        return n_rows
    return max(_SUBLANE, (requested // _SUBLANE) * _SUBLANE)


# ---------------------------------------------------------------------------
# Wrapper
# ---------------------------------------------------------------------------
def positional_encoding_forward(x, pe, *, p=0.1, training=False, seed=0,
                                block_rows=None, donate_x=False):
    """x: (S, B, D); pe: (max_len, 1, D). Returns dropout(x + pe[:S]) with torch semantics."""
    assert x.ndim == 3, "x must be (seq_len, batch, d_model)"
    S, B, D = x.shape
    assert pe.ndim == 3 and pe.shape[1] == 1 and pe.shape[2] == D and pe.shape[0] >= S

    itemsize = jnp.dtype(x.dtype).itemsize
    pe2 = pe[:S, 0, :].astype(x.dtype)                     # (S, D), same dtype as x

    use_dropout = bool(training) and p > 0.0
    if use_dropout and p >= 1.0:                           # torch: everything dropped
        return jnp.zeros_like(x)

    cparams = pltpu.CompilerParams(
        dimension_semantics=("parallel",),                 # order-independent tiles (v7x megacore)
        vmem_limit_bytes=32 * 1024 * 1024,
    )
    hbm_bytes = (2 * S * B * D + S * D) * itemsize

    use_flat = (B == 1) or (D % _LANE == 0)

    if use_flat:
        # ---- lane-dense 2-D path: free reshape (S, B, D) -> (S, B*D) ----
        C = B * D
        x2 = x.reshape(S, C)
        padded_row_bytes = _round_up(C, _LANE) * itemsize
        ts = (_legalize_block_rows(block_rows, S) if block_rows is not None
              else _choose_block_rows(S, padded_row_bytes))
        grid = (pl.cdiv(S, ts),)

        if not use_dropout:
            cost = pl.CostEstimate(flops=S * C, transcendentals=0, bytes_accessed=hbm_bytes)
            out2 = pl.pallas_call(
                functools.partial(_pe_add_flat_kernel, batch=B),
                out_shape=jax.ShapeDtypeStruct((S, C), x.dtype),
                grid_spec=pltpu.PrefetchScalarGridSpec(
                    num_scalar_prefetch=0,
                    grid=grid,
                    in_specs=[pl.BlockSpec((ts, C), lambda i: (i, 0)),
                              pl.BlockSpec((ts, D), lambda i: (i, 0))],
                    out_specs=pl.BlockSpec((ts, C), lambda i: (i, 0)),
                ),
                compiler_params=cparams,
                cost_estimate=cost,
                input_output_aliases=({0: 0} if donate_x else {}),
            )(x2, pe2)
        else:
            seed_arr = jnp.asarray(seed, dtype=jnp.int32).reshape(1)
            cost = pl.CostEstimate(flops=20 * S * C, transcendentals=0,
                                   bytes_accessed=hbm_bytes + 4)
            out2 = pl.pallas_call(
                functools.partial(_pe_add_dropout_flat_kernel,
                                  batch=B, p=float(p), block_rows=ts, n_cols=C),
                out_shape=jax.ShapeDtypeStruct((S, C), x.dtype),
                grid_spec=pltpu.PrefetchScalarGridSpec(
                    num_scalar_prefetch=1,
                    grid=grid,
                    in_specs=[pl.BlockSpec((ts, C), lambda i, s: (i, 0)),
                              pl.BlockSpec((ts, D), lambda i, s: (i, 0))],
                    out_specs=pl.BlockSpec((ts, C), lambda i, s: (i, 0)),
                ),
                compiler_params=cparams,
                cost_estimate=cost,
                input_output_aliases=({1: 0} if donate_x else {}),
            )(seed_arr, x2, pe2)
        return out2.reshape(S, B, D)

    # ---- fallback 3-D path: blocks (ts, B, D) + (ts, 1, D) ----
    pe3 = pe2.reshape(S, 1, D)
    padded_row_bytes = _round_up(B, _SUBLANE) * _round_up(D, _LANE) * itemsize
    ts = (_legalize_block_rows(block_rows, S) if block_rows is not None
          else _choose_block_rows(S, padded_row_bytes))
    grid = (pl.cdiv(S, ts),)

    if not use_dropout:
        cost = pl.CostEstimate(flops=S * B * D, transcendentals=0, bytes_accessed=hbm_bytes)
        return pl.pallas_call(
            _pe_add_3d_kernel,
            out_shape=jax.ShapeDtypeStruct((S, B, D), x.dtype),
            grid_spec=pltpu.PrefetchScalarGridSpec(
                num_scalar_prefetch=0,
                grid=grid,
                in_specs=[pl.BlockSpec((ts, B, D), lambda i: (i, 0, 0)),
                          pl.BlockSpec((ts, 1, D), lambda i: (i, 0, 0))],
                out_specs=pl.BlockSpec((ts, B, D), lambda i: (i, 0, 0)),
            ),
            compiler_params=cparams,
            cost_estimate=cost,
            input_output_aliases=({0: 0} if donate_x else {}),
        )(x, pe3)

    seed_arr = jnp.asarray(seed, dtype=jnp.int32).reshape(1)
    cost = pl.CostEstimate(flops=20 * S * B * D, transcendentals=0,
                           bytes_accessed=hbm_bytes + 4)
    return pl.pallas_call(
        functools.partial(_pe_add_dropout_3d_kernel,
                          p=float(p), block_rows=ts, batch=B, d_model=D),
        out_shape=jax.ShapeDtypeStruct((S, B, D), x.dtype),
        grid_spec=pltpu.PrefetchScalarGridSpec(
            num_scalar_prefetch=1,
            grid=grid,
            in_specs=[pl.BlockSpec((ts, B, D), lambda i, s: (i, 0, 0)),
                      pl.BlockSpec((ts, 1, D), lambda i, s: (i, 0, 0))],
            out_specs=pl.BlockSpec((ts, B, D), lambda i, s: (i, 0, 0)),
        ),
        compiler_params=cparams,
        cost_estimate=cost,
        input_output_aliases=({1: 0} if donate_x else {}),
    )(seed_arr, x, pe3)


# ---------------------------------------------------------------------------
# Test
# ---------------------------------------------------------------------------
if __name__ == "__main__":
    # Primary shape: lane-dense flat path, multi-step grid with a padded tail block.
    seq_len, batch, d_model = 20, 4, 128
    key = jax.random.PRNGKey(0)
    x = jax.random.normal(key, (seq_len, batch, d_model), dtype=jnp.float32)
    pe = make_positional_encoding(d_model, max_len=5000, dtype=x.dtype)
    ref = x + pe[:seq_len]

    # Eval mode (dropout is identity): default (budget-chosen) tile and forced 8-row tiles
    # (grid of 3 with a padded tail) must both match the pure-JAX reference exactly.
    out = positional_encoding_forward(x, pe, p=0.1, training=False)
    out = jax.block_until_ready(out)
    assert out.shape == x.shape and out.dtype == x.dtype
    assert jnp.allclose(out, ref, atol=1e-5, rtol=1e-5)

    out_tiled = positional_encoding_forward(x, pe, p=0.1, training=False, block_rows=8)
    out_tiled = jax.block_until_ready(out_tiled)
    assert jnp.allclose(out_tiled, ref, atol=1e-5, rtol=1e-5)

    # Training mode: mask bits come from the in-kernel hash (different RNG stream than
    # torch), so check dropout *structure*: every element is either exactly 0 or
    # (x + pe) / (1 - p), and the drop fraction is near p.
    p = 0.25
    out_tr = positional_encoding_forward(x, pe, p=p, training=True, seed=1234, block_rows=8)
    out_tr = jax.block_until_ready(out_tr)
    kept = jnp.abs(out_tr) > 0
    ok = jnp.where(kept, jnp.abs(out_tr * (1.0 - p) - ref) < 1e-4, jnp.abs(out_tr) == 0)
    assert bool(jnp.all(ok))
    drop_frac = 1.0 - float(jnp.mean(kept.astype(jnp.float32)))
    assert 0.1 < drop_frac < 0.4, f"unexpected drop fraction {drop_frac}"

    # Small-shape fallback path (d_model not a multiple of 128, batch < 8).
    x2 = jax.random.normal(jax.random.PRNGKey(1), (8, 2, 32), dtype=jnp.float32)
    pe2 = make_positional_encoding(32, max_len=64, dtype=x2.dtype)
    ref2 = x2 + pe2[:8]
    out2 = positional_encoding_forward(x2, pe2, p=0.1, training=False)
    out2 = jax.block_until_ready(out2)
    assert jnp.allclose(out2, ref2, atol=1e-5, rtol=1e-5)

    out2_tr = positional_encoding_forward(x2, pe2, p=0.5, training=True, seed=7)
    out2_tr = jax.block_until_ready(out2_tr)
    kept2 = jnp.abs(out2_tr) > 0
    ok2 = jnp.where(kept2, jnp.abs(out2_tr * 0.5 - ref2) < 1e-4, jnp.abs(out2_tr) == 0)
    assert bool(jnp.all(ok2))

    print("KERNEL_OK")
</pallas_src>

<mosaic_0001>
module attributes {stable_mosaic.version = 11 : i64} {
  func.func @_pe_add_flat_kernel(%arg0: i32, %arg1: memref<20x512xf32, #tpu.memory_space<vmem>>, %arg2: memref<20x128xf32, #tpu.memory_space<vmem>>, %arg3: memref<20x512xf32, #tpu.memory_space<vmem>>) attributes {dimension_semantics = [#tpu.dimension_semantics<parallel>], iteration_bounds = array<i64: 1>, scalar_prefetch = 0 : i64, scratch_operands = 0 : i64, tpu.core_type = #tpu.core_type<tc>, window_params = [{transform_indices = @transform_0, window_bounds = array<i64: 20, 512>}, {transform_indices = @transform_1, window_bounds = array<i64: 20, 128>}, {transform_indices = @transform_2, window_bounds = array<i64: 20, 512>}]} {
    %c0 = arith.constant 0 : index
    %c0_0 = arith.constant 0 : index
    %0 = vector.load %arg2[%c0, %c0_0] : memref<20x128xf32, #tpu.memory_space<vmem>>, vector<20x128xf32>
    %1 = tpu.concatenate %0, %0, %0, %0 in 1 : vector<20x128xf32>, vector<20x128xf32>, vector<20x128xf32>, vector<20x128xf32> -> vector<20x512xf32>
    %c0_1 = arith.constant 0 : index
    %c0_2 = arith.constant 0 : index
    %2 = vector.load %arg1[%c0_1, %c0_2] : memref<20x512xf32, #tpu.memory_space<vmem>>, vector<20x512xf32>
    %3 = arith.addf %2, %1 : vector<20x512xf32>
    %c0_3 = arith.constant 0 : index
    %c0_4 = arith.constant 0 : index
    %4 = vector.load %arg3[%c0_3, %c0_4] : memref<20x512xf32, #tpu.memory_space<vmem>>, vector<20x512xf32>
    tpu.vector_store %arg3[%c0_3, %c0_4], %3 {strides = array<i32>} : memref<20x512xf32, #tpu.memory_space<vmem>>, vector<20x512xf32>,
    return
  }
  func.func @transform_0(%arg0: i32) -> (i32, i32) {
    %c0_i32 = arith.constant 0 : i32
    %c0_i32_0 = arith.constant 0 : i32
    return %arg0, %c0_i32 : i32, i32
  }
  func.func @transform_1(%arg0: i32) -> (i32, i32) {
    %c0_i32 = arith.constant 0 : i32
    %c0_i32_0 = arith.constant 0 : i32
    return %arg0, %c0_i32 : i32, i32
  }
  func.func @transform_2(%arg0: i32) -> (i32, i32) {
    %c0_i32 = arith.constant 0 : i32
    %c0_i32_0 = arith.constant 0 : i32
    return %arg0, %c0_i32 : i32, i32
  }
}

</mosaic_0001>

<bundles_post_ra>
// kernel: tpu_custom_call.1
= control target key start
LH: loop header
LB: loop body
LE: loop exit
PB: predicated region body
PF: predicated region fallthrough
CT: control target
= control target key end

     0   :  { %7 = vsyncpa [#allocation3], 0  ;;  %s240_s0 = inlined_call_operand.hbm [shape: f32[20,512], index: 0, kind: input, shape index: {}]   ;;  %s241_s1 = inlined_call_operand.hbm [shape: f32[20,128], index: 1, kind: input, shape index: {}]   ;;  %s242_s2 = inlined_call_operand.hbm [shape: f32[20,512], index: 2, kind: output, shape index: {}]  }
   0x1   :  { %8 = vsyncpa [#allocation6], 0 }
   0x2   :  { %9 = vsyncpa [#allocation4], 0  ;;  %s176_s9 = smov [#allocation2]   ;;  %s104_s13 = scalar_lea.hbm %s240_s0, 1536 }
   0x3   :  { %s15_s10 = sshll.u32 %s176_s9, 4  ;;  %p105_p0 = scmp.ne.s32.totalorder %s240_s0, %s104_s13  ;;  %s16_s10 = int_to_ptr.vmem [resolvable:$true] %s15_s10 }
   0x4   :  { %p108_p1 = scmp.lt.u32.totalorder %s104_s13, %s240_s0 }
   0x6   :  { %p110_p2 = pnand %p108_p1, %p105_p0 }
   0x8   :  { %113 = shalt.err (!%p110_p2)
}
   0x9   :  { %s114_s18 = scalar_lea.vmem %s16_s10, 1536  ;;  %p119_p4 = scmp.lt.s32.totalorder %s16_s10, %s16_s10 }
   0xa   :  { %p115_p3 = scmp.ne.s32.totalorder %s16_s10, %s114_s18  ;;  %p120_p5 = scmp.lt.s32.totalorder %s114_s18, %s114_s18 }
   0xc   :  { %p121_p6 = por %p120_p5, %p119_p4 }
   0xe   :  { %p122_p7 = pnand %p121_p6, %p115_p3 }
  0x10   :  { %125 = shalt.err (!%p122_p7)
}
  0x11   :  { %s177_s19 = smov 512   ;;  %s178_s20 = smov 32  }
  0x12   :  { %21 = dma.hbm_to_vmem [thread:$0]  %s240_s0, 1536, %s16_s10, [#allocation3], %s177_s19, %s177_s19, %s178_s20  }
  0x13   :  { %s179_s23 = smov [#allocation5]   ;;  %s126_s27 = scalar_lea.hbm %s241_s1, 384 }
  0x14   :  { %s27_s24 = sshll.u32 %s179_s23, 4  ;;  %p127_p8 = scmp.ne.s32.totalorder %s241_s1, %s126_s27  ;;  %s28_s24 = int_to_ptr.vmem [resolvable:$true] %s27_s24 }
  0x15   :  { %p130_p9 = scmp.lt.u32.totalorder %s126_s27, %s241_s1 }
  0x17   :  { %p132_p10 = pnand %p130_p9, %p127_p8 }
  0x19   :  { %135 = shalt.err (!%p132_p10)
}
  0x1a   :  { %s136_s4 = scalar_lea.vmem %s28_s24, 384  ;;  %p141_p12 = scmp.lt.s32.totalorder %s28_s24, %s28_s24 }
  0x1b   :  { %p137_p11 = scmp.ne.s32.totalorder %s28_s24, %s136_s4  ;;  %p142_p13 = scmp.lt.s32.totalorder %s136_s4, %s136_s4 }
  0x1d   :  { %p143_p0 = por %p142_p13, %p141_p12 }
  0x1f   :  { %p144_p1 = pnand %p143_p0, %p137_p11 }
  0x21   :  { %147 = shalt.err (!%p144_p1)
}
  0x22   :  { %s180_s0 = smov 128   ;;  %s181_s5 = smov 8  }
  0x23   :  { %33 = dma.hbm_to_vmem [thread:$0]  %s241_s1, 384, %s28_s24, [#allocation6], %s180_s0, %s180_s0, %s181_s5  }
  0x24   :  { %170 = dma.done.wait [#allocation3], 1536  }
  0x25   :  { %171 = vsyncadd [#allocation3], 4294965760 }
  0x26   :  { %172 = dma.done.wait [#allocation6], 384  }
  0x27   :  { %173 = vsyncadd [#allocation6], 4294966912  ;;  %v40_v0 = vld [vmem:[#allocation5] sm:$0xff]  ;;  %v44_v2 = vld [vmem:[#allocation2 + $0x8] sm:$0xff]  ;;  %s182_s8 = smov [#allocation7]  }
  0x28   :  { %v43_v1 = vld [vmem:[#allocation2] sm:$0xff]  ;;  %v56_v4 = vadd.f32 %v44_v2, %v40_v0  ;;  %v45_v5 = vld [vmem:[#allocation2 + $0x10] sm:$0xff]  ;;  %v46_v6 = vld [vmem:[#allocation2 + $0x18] sm:$0xff]  ;;  %s84_s9 = sshll.u32 %s182_s8, 4  ;;  %s85_s9 = int_to_ptr.vmem [resolvable:$true] %s84_s9 }
  0x29   :  { %v55_v3 = vadd.f32 %v43_v1, %v40_v0  ;;  %v41_v7 = vld [vmem:[#allocation5 + $0x8] sm:$0xff]  ;;  %v57_v8 = vadd.f32 %v45_v5, %v40_v0  ;;  %v58_v9 = vadd.f32 %v46_v6, %v40_v0  ;;  %v47_v10 = vld [vmem:[#allocation2 + $0x20] sm:$0xff]  ;;  %v49_v12 = vld [vmem:[#allocation2 + $0x30] sm:$0xff]  ;;  %s148_s1 = scalar_lea.vmem %s85_s9, 1536  ;;  %p153_p3 = scmp.lt.s32.totalorder %s85_s9, %s85_s9 }
  0x2a   :  { %v48_v11 = vld [vmem:[#allocation2 + $0x28] sm:$0xff]  ;;  %68 = vst [vmem:[#allocation7 + $0x8] sm:$0xff] %v56_v4  ;;  %v59_v13 = vadd.f32 %v47_v10, %v41_v7  ;;  %v61_v15 = vadd.f32 %v49_v12, %v41_v7  ;;  %v50_v16 = vld [vmem:[#allocation2 + $0x38] sm:$0xff]  ;;  %v42_v17 = vld [vmem:[#allocation5 + $0x10] sm:$0xf]  ;;  %p149_p2 = scmp.ne.s32.totalorder %s85_s9, %s148_s1  ;;  %p154_p4 = scmp.lt.s32.totalorder %s148_s1, %s148_s1 }
  0x2b   :  { %67 = vst [vmem:[#allocation7] sm:$0xff] %v55_v3  ;;  %v60_v14 = vadd.f32 %v48_v11, %v41_v7  ;;  %v51_v18 = vld [vmem:[#allocation2 + $0x40] sm:$0xf]  ;;  %69 = vst [vmem:[#allocation7 + $0x10] sm:$0xff] %v57_v8  ;;  %v62_v19 = vadd.f32 %v50_v16, %v41_v7  ;;  %v52_v21 = vld [vmem:[#allocation2 + $0x48] sm:$0xf] }
  0x2c   :  { %70 = vst [vmem:[#allocation7 + $0x18] sm:$0xff] %v58_v9  ;;  %v63_v20 = vadd.f32 %v51_v18, %v42_v17  ;;  %v53_v22 = vld [vmem:[#allocation2 + $0x50] sm:$0xf]  ;;  %v54_v23 = vld [vmem:[#allocation2 + $0x58] sm:$0xf]  ;;  %71 = vst [vmem:[#allocation7 + $0x20] sm:$0xff] %v59_v13  ;;  %v64_v24 = vadd.f32 %v52_v21, %v42_v17  ;;  %p155_p5 = por %p154_p4, %p153_p3 }
  0x2d   :  { %72 = vst [vmem:[#allocation7 + $0x28] sm:$0xff] %v60_v14  ;;  %73 = vst [vmem:[#allocation7 + $0x30] sm:$0xff] %v61_v15  ;;  %v65_v25 = vadd.f32 %v53_v22, %v42_v17  ;;  %v66_v26 = vadd.f32 %v54_v23, %v42_v17 }
  0x2e   :  { %74 = vst [vmem:[#allocation7 + $0x38] sm:$0xff] %v62_v19  ;;  %75 = vst [vmem:[#allocation7 + $0x40] sm:$0xf] %v63_v20  ;;  %p156_p6 = pnand %p155_p5, %p149_p2 }
  0x2f   :  { %76 = vst [vmem:[#allocation7 + $0x48] sm:$0xf] %v64_v24  ;;  %77 = vst [vmem:[#allocation7 + $0x50] sm:$0xf] %v65_v25 }
  0x30   :  { %78 = vst [vmem:[#allocation7 + $0x58] sm:$0xf] %v66_v26 }
  0x31   :  { %159 = shalt.err (!%p156_p6)
}
  0x32   :  { %s160_s12 = scalar_lea.hbm %s242_s2, 1536 }
  0x33   :  { %p161_p7 = scmp.ne.s32.totalorder %s242_s2, %s160_s12  ;;  %p164_p8 = scmp.lt.u32.totalorder %s160_s12, %s242_s2 }
  0x35   :  { %p166_p9 = pnand %p164_p8, %p161_p7 }
  0x37   :  { %169 = shalt.err (!%p166_p9)
}
  0x38   :  { %90 = dma.vmem_to_hbm [thread:$0]  %s85_s9, 1536, %s242_s2, [#allocation4], %s177_s19, %s177_s19, %s178_s20  }
  0x39   :  { %174 = dma.done.wait [#allocation4], 1536  }
  0x3a   :  { %175 = vsyncadd [#allocation4], 4294965760 }
  0x3b   :  { %94 = vsyncpa [#allocation3], 1 }
  0x3c   :  { %95 = vsyncpa [#allocation6], 1 }
  0x3d   :  { %96 = vsyncpa [#allocation4], 1 }

</bundles_post_ra>
